<compile_context>
chip_gen: v5e
topology: v5e:2x2
jax: 0.10.0
libtpu: 0.0.40
codegen_flags: <defaults>
</compile_context>

<pallas_src>
import functools

import jax
import jax.numpy as jnp
import numpy as np
from jax.experimental import pallas as pl
from jax.experimental.pallas import tpu as pltpu

_LANE = 128                      # pad all feature dims to a multiple of this
_SUBLANE = 8                     # pad batch tiles to a multiple of this
_MAX_TB = 1024                   # max batch-tile rows (amortizes per-step overhead)
_VMEM_BUDGET_BYTES = 40 << 20    # per fused call; safe on v7x's 64 MiB physical VMEM


def _round_up(v, m):
    return ((v + m - 1) // m) * m


# ----------------------------------------------------------------------------
# Fused Pallas kernel: a chain of Linear(+ReLU) layers in one body
# ----------------------------------------------------------------------------
def _fused_mlp_kernel(x_ref, *refs, n_layers, relu_last):
    # refs = (w0, b0, w1, b1, ..., w_{L-1}, b_{L-1}, o_ref)
    o_ref = refs[-1]
    h = x_ref[...].astype(jnp.float32)
    for li in range(n_layers):
        w = refs[2 * li][...]                               # bf16, resident in VMEM
        b = refs[2 * li + 1][...].astype(jnp.float32)       # (1, N_pad)
        # bf16 x bf16 on the MXU, f32 accumulation; elementwise work stays f32.
        h = jnp.dot(h.astype(w.dtype), w, preferred_element_type=jnp.float32) + b
        if li != n_layers - 1 or relu_last:
            h = jnp.maximum(h, 0.0)
    o_ref[...] = h.astype(o_ref.dtype)


# ----------------------------------------------------------------------------
# Parameter construction (deterministic, in-script)
# ----------------------------------------------------------------------------
def init_decoder_params(key, noise_dim, decompress_dims, data_dim, dtype=jnp.float32):
    """PyTorch-Linear-style uniform init. Weights stored as (in, out): y = x @ W + b."""
    dims = [noise_dim] + list(decompress_dims) + [data_dim]
    params = []
    for i in range(len(dims) - 1):
        fan_in, fan_out = dims[i], dims[i + 1]
        key, kw, kb = jax.random.split(key, 3)
        bound = 1.0 / np.sqrt(fan_in)
        w = jax.random.uniform(kw, (fan_in, fan_out), dtype, -bound, bound)
        b = jax.random.uniform(kb, (fan_out,), dtype, -bound, bound)
        params.append((w, b))
    sigma = jnp.ones((data_dim,), dtype) * 0.1  # requires_grad=False buffer
    return params, sigma


def pad_decoder_params(params, lane=_LANE, dtype=jnp.bfloat16):
    """Zero-pad every (W, b) to 128-lane-aligned dims and cast to bf16, ONCE at init.

    Exact w.r.t. padding: padded input columns multiply zero weight rows; padded output
    columns get zero bias -> zero activation -> zero contribution downstream. Biases are
    pre-reshaped to (1, N_pad) so the kernel just broadcast-adds them.
    """
    padded = []
    for w, b in params:
        k, n = w.shape
        kp, npad = _round_up(k, lane), _round_up(n, lane)
        wp = jnp.zeros((kp, npad), dtype).at[:k, :n].set(w.astype(dtype))
        bp = jnp.zeros((1, npad), dtype).at[0, :n].set(b.astype(dtype))
        padded.append((wp, bp))
    return padded


# ----------------------------------------------------------------------------
# Tiling / VMEM heuristics
# ----------------------------------------------------------------------------
def _choose_batch_tile(B):
    """Batch tile: <=1024 rows, >=2 grid steps when possible (v7x has 2 TensorCores),
    sized as round_up(B/n_tiles, 8) to minimize zero-row padding waste."""
    b_up = _round_up(B, _SUBLANE)
    n_tiles = pl.cdiv(b_up, _MAX_TB)
    if b_up >= 2 * _SUBLANE:
        n_tiles = max(n_tiles, 2)
    return _round_up(pl.cdiv(b_up, n_tiles), _SUBLANE)


def _group_vmem_bytes(group, tb, act_itemsize=4):
    """Estimate VMEM for one fused call (Pallas double-buffers every BlockSpec)."""
    w_bytes = sum(w.size * w.dtype.itemsize + b.size * b.dtype.itemsize for w, b in group)
    k_pad = group[0][0].shape[0]
    n_pad = group[-1][0].shape[1]
    act_bytes = tb * (k_pad + n_pad) * act_itemsize
    return 2 * (w_bytes + act_bytes)


def _split_into_groups(padded_params, tb, budget_bytes):
    """Greedily group consecutive layers so each fused call fits the VMEM budget."""
    groups, cur = [], []
    for layer in padded_params:
        cand = cur + [layer]
        if cur and _group_vmem_bytes(cand, tb) > budget_bytes:
            groups.append(cur)
            cur = [layer]
        else:
            cur = cand
    groups.append(cur)
    # TODO(synk): if a SINGLE layer exceeds the budget, add a K-tiled ("arbitrary" axis)
    # accumulator path instead of keeping that layer fully resident.
    return groups


# ----------------------------------------------------------------------------
# Wrapper: fused pallas_call(s) for the decoder MLP
# ----------------------------------------------------------------------------
def _fused_group_call(xp, group, relu_last, tb):
    b_pad, k_pad = xp.shape
    n_layers = len(group)
    n_out_pad = group[-1][0].shape[1]

    flat_inputs = [xp]
    in_specs = [pl.BlockSpec((tb, k_pad), lambda i: (i, 0))]
    flops = 0
    bytes_accessed = xp.size * xp.dtype.itemsize
    for w, b in group:
        flat_inputs += [w, b]
        in_specs += [
            pl.BlockSpec(w.shape, lambda i: (0, 0)),   # full weight resident in VMEM
            pl.BlockSpec(b.shape, lambda i: (0, 0)),   # (1, N_pad) bias resident
        ]
        flops += 2 * b_pad * w.shape[0] * w.shape[1]
        bytes_accessed += w.size * w.dtype.itemsize + b.size * b.dtype.itemsize
    bytes_accessed += b_pad * n_out_pad * xp.dtype.itemsize

    vmem_limit = int(min(48 << 20,
                         max(_group_vmem_bytes(group, tb) + (4 << 20), 16 << 20)))

    return pl.pallas_call(
        functools.partial(_fused_mlp_kernel, n_layers=n_layers, relu_last=relu_last),
        out_shape=jax.ShapeDtypeStruct((b_pad, n_out_pad), xp.dtype),
        grid=(b_pad // tb,),
        in_specs=in_specs,
        out_specs=pl.BlockSpec((tb, n_out_pad), lambda i: (i, 0)),
        compiler_params=pltpu.CompilerParams(
            dimension_semantics=("parallel",),      # batch tiles shard across TCs (v7x)
            vmem_limit_bytes=vmem_limit,
        ),
        cost_estimate=pl.CostEstimate(
            flops=flops, transcendentals=0, bytes_accessed=bytes_accessed
        ),
    )(*flat_inputs)


def fused_decoder_mlp(x, padded_params, data_dim):
    B, K = x.shape
    k0_pad = padded_params[0][0].shape[0]
    n_last_pad = padded_params[-1][0].shape[1]

    tb = _choose_batch_tile(B)
    b_pad = _round_up(B, tb)

    if b_pad == B and k0_pad == K:
        xp = x                                            # skip redundant pad copy
    else:
        xp = jnp.zeros((b_pad, k0_pad), x.dtype).at[:B, :K].set(x)

    groups = _split_into_groups(padded_params, tb, _VMEM_BUDGET_BYTES)
    h = xp
    for gi, group in enumerate(groups):
        last_group = gi == len(groups) - 1
        h = _fused_group_call(h, group, relu_last=not last_group, tb=tb)

    if b_pad == B and n_last_pad == data_dim:
        return h                                          # skip redundant slice copy
    return h[:B, :data_dim]


def decoder_forward(padded_params, sigma, x, data_dim):
    """Replicates Decoder.forward: returns (seq(x), sigma)."""
    return fused_decoder_mlp(x, padded_params, data_dim), sigma


# Pure-JAX reference (uses the unpadded f32 params) for a sanity check.
def decoder_forward_ref(params, sigma, x):
    h = x
    n_layers = len(params)
    for li, (w, b) in enumerate(params):
        h = h @ w + b
        if li != n_layers - 1:
            h = jnp.maximum(h, 0.0)
    return h, sigma


if __name__ == "__main__":
    # Small shapes consistent with the module.
    batch = 8
    noise_dim = 32
    decompress_dims = (32, 64)
    data_dim = 16

    key = jax.random.PRNGKey(0)
    key, kx = jax.random.split(key)
    x = jax.random.normal(kx, (batch, noise_dim), jnp.float32)

    params, sigma = init_decoder_params(key, noise_dim, decompress_dims, data_dim)
    padded_params = pad_decoder_params(params)   # pad + bf16 cast once, reused every call

    out, sig = decoder_forward(padded_params, sigma, x, data_dim)
    out = jax.block_until_ready(out)
    sig = jax.block_until_ready(sig)

    # Check against pure-JAX f32 reference (bf16 weights -> loosened tolerance).
    ref_out, ref_sig = decoder_forward_ref(params, sigma, x)
    np.testing.assert_allclose(np.asarray(out), np.asarray(ref_out), rtol=2e-2, atol=2e-2)
    np.testing.assert_allclose(np.asarray(sig), np.asarray(ref_sig), rtol=0, atol=0)
    assert out.shape == (batch, data_dim)
    assert sig.shape == (data_dim,)

    print("KERNEL_OK")
</pallas_src>

<mosaic_0001>
module attributes {stable_mosaic.version = 11 : i64} {
  func.func @_fused_mlp_kernel(%arg0: i32, %arg1: memref<8x128xf32, #tpu.memory_space<vmem>>, %arg2: memref<128x128xbf16, #tpu.memory_space<vmem>>, %arg3: memref<1x128xbf16, #tpu.memory_space<vmem>>, %arg4: memref<128x128xbf16, #tpu.memory_space<vmem>>, %arg5: memref<1x128xbf16, #tpu.memory_space<vmem>>, %arg6: memref<128x128xbf16, #tpu.memory_space<vmem>>, %arg7: memref<1x128xbf16, #tpu.memory_space<vmem>>, %arg8: memref<8x128xf32, #tpu.memory_space<vmem>>) attributes {dimension_semantics = [#tpu.dimension_semantics<parallel>], iteration_bounds = array<i64: 1>, scalar_prefetch = 0 : i64, scratch_operands = 0 : i64, tpu.core_type = #tpu.core_type<tc>, window_params = [{transform_indices = @transform_0, window_bounds = array<i64: 8, 128>}, {pipeline_mode = #tpu.pipeline_mode<synchronous>, transform_indices = @transform_1, window_bounds = array<i64: 128, 128>}, {pipeline_mode = #tpu.pipeline_mode<synchronous>, transform_indices = @transform_2, window_bounds = array<i64: 1, 128>}, {pipeline_mode = #tpu.pipeline_mode<synchronous>, transform_indices = @transform_3, window_bounds = array<i64: 128, 128>}, {pipeline_mode = #tpu.pipeline_mode<synchronous>, transform_indices = @transform_4, window_bounds = array<i64: 1, 128>}, {pipeline_mode = #tpu.pipeline_mode<synchronous>, transform_indices = @transform_5, window_bounds = array<i64: 128, 128>}, {pipeline_mode = #tpu.pipeline_mode<synchronous>, transform_indices = @transform_6, window_bounds = array<i64: 1, 128>}, {transform_indices = @transform_7, window_bounds = array<i64: 8, 128>}]} {
    %c0 = arith.constant 0 : index
    %c0_0 = arith.constant 0 : index
    %0 = vector.load %arg1[%c0, %c0_0] : memref<8x128xf32, #tpu.memory_space<vmem>>, vector<8x128xf32>
    %c0_1 = arith.constant 0 : index
    %c0_2 = arith.constant 0 : index
    %1 = vector.load %arg2[%c0_1, %c0_2] : memref<128x128xbf16, #tpu.memory_space<vmem>>, vector<128x128xbf16>
    %c0_3 = arith.constant 0 : index
    %c0_4 = arith.constant 0 : index
    %2 = vector.load %arg3[%c0_3, %c0_4] : memref<1x128xbf16, #tpu.memory_space<vmem>>, vector<1x128xbf16>
    %3 = arith.extf %2 : vector<1x128xbf16> to vector<1x128xf32>
    %4 = arith.truncf %0 : vector<8x128xf32> to vector<8x128xbf16>
    %cst = arith.constant dense<0.000000e+00> : vector<8x128xf32>
    %5 = tpu.matmul %4, %1, %cst {dimension_numbers = #tpu.dot_dimension_numbers<[1], [0], [0], [1], [0, 0, 1, 1], [], []>} : vector<8x128xbf16>, vector<128x128xbf16>, vector<8x128xf32> -> vector<8x128xf32>
    %6 = vector.broadcast %3 : vector<1x128xf32> to vector<8x128xf32>
    %7 = arith.addf %5, %6 : vector<8x128xf32>
    %cst_5 = arith.constant 0.000000e+00 : f32
    %8 = vector.broadcast %cst_5 : f32 to vector<8x128xf32>
    %9 = arith.maximumf %7, %8 : vector<8x128xf32>
    %c0_6 = arith.constant 0 : index
    %c0_7 = arith.constant 0 : index
    %10 = vector.load %arg4[%c0_6, %c0_7] : memref<128x128xbf16, #tpu.memory_space<vmem>>, vector<128x128xbf16>
    %c0_8 = arith.constant 0 : index
    %c0_9 = arith.constant 0 : index
    %11 = vector.load %arg5[%c0_8, %c0_9] : memref<1x128xbf16, #tpu.memory_space<vmem>>, vector<1x128xbf16>
    %12 = arith.extf %11 : vector<1x128xbf16> to vector<1x128xf32>
    %13 = arith.truncf %9 : vector<8x128xf32> to vector<8x128xbf16>
    %cst_10 = arith.constant dense<0.000000e+00> : vector<8x128xf32>
    %14 = tpu.matmul %13, %10, %cst_10 {dimension_numbers = #tpu.dot_dimension_numbers<[1], [0], [0], [1], [0, 0, 1, 1], [], []>} : vector<8x128xbf16>, vector<128x128xbf16>, vector<8x128xf32> -> vector<8x128xf32>
    %15 = vector.broadcast %12 : vector<1x128xf32> to vector<8x128xf32>
    %16 = arith.addf %14, %15 : vector<8x128xf32>
    %cst_11 = arith.constant 0.000000e+00 : f32
    %17 = vector.broadcast %cst_11 : f32 to vector<8x128xf32>
    %18 = arith.maximumf %16, %17 : vector<8x128xf32>
    %c0_12 = arith.constant 0 : index
    %c0_13 = arith.constant 0 : index
    %19 = vector.load %arg6[%c0_12, %c0_13] : memref<128x128xbf16, #tpu.memory_space<vmem>>, vector<128x128xbf16>
    %c0_14 = arith.constant 0 : index
    %c0_15 = arith.constant 0 : index
    %20 = vector.load %arg7[%c0_14, %c0_15] : memref<1x128xbf16, #tpu.memory_space<vmem>>, vector<1x128xbf16>
    %21 = arith.extf %20 : vector<1x128xbf16> to vector<1x128xf32>
    %22 = arith.truncf %18 : vector<8x128xf32> to vector<8x128xbf16>
    %cst_16 = arith.constant dense<0.000000e+00> : vector<8x128xf32>
    %23 = tpu.matmul %22, %19, %cst_16 {dimension_numbers = #tpu.dot_dimension_numbers<[1], [0], [0], [1], [0, 0, 1, 1], [], []>} : vector<8x128xbf16>, vector<128x128xbf16>, vector<8x128xf32> -> vector<8x128xf32>
    %24 = vector.broadcast %21 : vector<1x128xf32> to vector<8x128xf32>
    %25 = arith.addf %23, %24 : vector<8x128xf32>
    %c0_17 = arith.constant 0 : index
    %c0_18 = arith.constant 0 : index
    %26 = vector.load %arg8[%c0_17, %c0_18] : memref<8x128xf32, #tpu.memory_space<vmem>>, vector<8x128xf32>
    tpu.vector_store %arg8[%c0_17, %c0_18], %25 {strides = array<i32>} : memref<8x128xf32, #tpu.memory_space<vmem>>, vector<8x128xf32>,
    return
  }
  func.func @transform_0(%arg0: i32) -> (i32, i32) {
    %c0_i32 = arith.constant 0 : i32
    %c0_i32_0 = arith.constant 0 : i32
    return %arg0, %c0_i32 : i32, i32
  }
  func.func @transform_1(%arg0: i32) -> (i32, i32) {
    %c0_i32 = arith.constant 0 : i32
    %c0_i32_0 = arith.constant 0 : i32
    %c0_i32_1 = arith.constant 0 : i32
    return %c0_i32, %c0_i32_0 : i32, i32
  }
  func.func @transform_2(%arg0: i32) -> (i32, i32) {
    %c0_i32 = arith.constant 0 : i32
    %c0_i32_0 = arith.constant 0 : i32
    %c0_i32_1 = arith.constant 0 : i32
    return %c0_i32, %c0_i32_0 : i32, i32
  }
  func.func @transform_3(%arg0: i32) -> (i32, i32) {
    %c0_i32 = arith.constant 0 : i32
    %c0_i32_0 = arith.constant 0 : i32
    %c0_i32_1 = arith.constant 0 : i32
    return %c0_i32, %c0_i32_0 : i32, i32
  }
  func.func @transform_4(%arg0: i32) -> (i32, i32) {
    %c0_i32 = arith.constant 0 : i32
    %c0_i32_0 = arith.constant 0 : i32
    %c0_i32_1 = arith.constant 0 : i32
    return %c0_i32, %c0_i32_0 : i32, i32
  }
  func.func @transform_5(%arg0: i32) -> (i32, i32) {
    %c0_i32 = arith.constant 0 : i32
    %c0_i32_0 = arith.constant 0 : i32
    %c0_i32_1 = arith.constant 0 : i32
    return %c0_i32, %c0_i32_0 : i32, i32
  }
  func.func @transform_6(%arg0: i32) -> (i32, i32) {
    %c0_i32 = arith.constant 0 : i32
    %c0_i32_0 = arith.constant 0 : i32
    %c0_i32_1 = arith.constant 0 : i32
    return %c0_i32, %c0_i32_0 : i32, i32
  }
  func.func @transform_7(%arg0: i32) -> (i32, i32) {
    %c0_i32 = arith.constant 0 : i32
    %c0_i32_0 = arith.constant 0 : i32
    return %arg0, %c0_i32 : i32, i32
  }
}

</mosaic_0001>

<bundles_post_ra>
// kernel: tpu_custom_call.1
= control target key start
LH: loop header
LB: loop body
LE: loop exit
PB: predicated region body
PF: predicated region fallthrough
CT: control target
= control target key end

     0   :  { %12 = vsyncpa [#allocation3], 0  ;;  %s680_s0 = inlined_call_operand.hbm [shape: f32[8,128], index: 0, kind: input, shape index: {}]   ;;  %s681_s1 = inlined_call_operand.hbm [shape: bf16[128,128], index: 1, kind: input, shape index: {}]   ;;  %s682_s2 = inlined_call_operand.vmem [shape: bf16[1,128], index: 2, kind: input, shape index: {}]   ;;  %s683_s3 = inlined_call_operand.hbm [shape: bf16[128,128], index: 3, kind: input, shape index: {}]   ;;  %s684_s4 = inlined_call_operand.vmem [shape: bf16[1,128], index: 4, kind: input, shape index: {}]   ;;  %s685_s5 = inlined_call_operand.hbm [shape: bf16[128,128], index: 5, kind: input, shape index: {}]   ;;  %s686_s6 = inlined_call_operand.vmem [shape: bf16[1,128], index: 6, kind: input, shape index: {}]   ;;  %s687_s7 = inlined_call_operand.hbm [shape: f32[8,128], index: 7, kind: output, shape index: {}]  }
   0x1   :  { %13 = vsyncpa [#allocation6], 0 }
   0x2   :  { %14 = vsyncpa [#allocation9], 0  ;;  %s31_s26 = sshll.u32 %s681_s1, 4  ;;  %s32_s26 = int_to_ptr.hbm [resolvable:$true] %s31_s26 }
   0x3   :  { %15 = vsyncpa [#allocation4], 0  ;;  %s609_s27 = smov [#allocation5]   ;;  %s21_s8 = sshll.u32 %s680_s0, 4  ;;  %s22_s8 = int_to_ptr.hbm [resolvable:$true] %s21_s8 }
   0x4   :  { %s33_s28 = sshll.u32 %s609_s27, 4  ;;  %s610_s9 = smov 64   ;;  %s34_s28 = int_to_ptr.vmem [resolvable:$true] %s33_s28 }
   0x5   :  { %s611_s10 = smov 4   ;;  %s612_s11 = smov [#allocation2]  }
   0x6   :  { %39 = dma.hbm_to_vmem [thread:$0]  %s32_s26, 1024, %s34_s28, [#allocation6], %s610_s9, %s610_s9, %s611_s10  }
   0x7   :  { %s23_s12 = sshll.u32 %s612_s11, 4  ;;  %s46_s15 = sshll.u32 %s683_s3, 4  ;;  %s24_s12 = int_to_ptr.vmem [resolvable:$true] %s23_s12  ;;  %s47_s15 = int_to_ptr.hbm [resolvable:$true] %s46_s15 }
   0x8   :  { %26 = dma.hbm_to_vmem [thread:$0]  %s22_s8, 128, %s24_s12, [#allocation3]  }
   0x9   :  { %s61_s17 = sshll.u32 %s685_s5, 4  ;;  %s613_s18 = smov [#allocation7]   ;;  %s62_s17 = int_to_ptr.hbm [resolvable:$true] %s61_s17 }
   0xa   :  { %s48_s19 = sshll.u32 %s613_s18, 4  ;;  %s614_s0 = smov [#allocation8]   ;;  %s49_s19 = int_to_ptr.vmem [resolvable:$true] %s48_s19 }
   0xb   :  { %54 = dma.hbm_to_vmem [thread:$0]  %s47_s15, 1024, %s49_s19, [#allocation6], %s610_s9, %s610_s9, %s611_s10  }
   0xc   :  { %s63_s20 = sshll.u32 %s614_s0, 4  ;;  %s64_s20 = int_to_ptr.vmem [resolvable:$true] %s63_s20 }
   0xd   :  { %69 = dma.hbm_to_vmem [thread:$0]  %s62_s17, 1024, %s64_s20, [#allocation9], %s610_s9, %s610_s9, %s611_s10  }
   0xe   :  { %601 = dma.done.wait [#allocation3], 128  }
   0xf   :  { %602 = vsyncadd [#allocation3], 4294967168 }
  0x10   :  { %603 = dma.done.wait [#allocation6], 2048  }
  0x11   :  { %604 = vsyncadd [#allocation6], 4294965248 }
  0x12   :  { %605 = dma.done.wait [#allocation9], 1024  }
  0x13   :  { %606 = vsyncadd [#allocation9], 4294966272  ;;  %v457_v0 = vld [vmem:[#allocation5 + $0x38] sm:$0xff]  ;;  %v456_v1 = vld [vmem:[#allocation5 + $0x30] sm:$0xff]  ;;  %s615_s24 = smov [#allocation10]  }
  0x14   :  { %157 = vmatpush.bf16.msra.mxu0 %v457_v0  ;;  %v465_v2 = vld [vmem:[#allocation7 + $0x38] sm:$0xff]  ;;  %v464_v3 = vld [vmem:[#allocation7 + $0x30] sm:$0xff]  ;;  %v455_v4 = vld [vmem:[#allocation5 + $0x28] sm:$0xff]  ;;  %s340_s25 = sshll.u32 %s615_s24, 4  ;;  %s341_s25 = int_to_ptr.vmem [resolvable:$true] %s340_s25 }
  0x15   :  { %239 = vmatpush.bf16.msra.mxu1 %v465_v2  ;;  %v463_v5 = vld [vmem:[#allocation7 + $0x28] sm:$0xff]  ;;  %v454_v6 = vld [vmem:[#allocation5 + $0x20] sm:$0xff]  ;;  %v453_v8 = vld [vmem:[#allocation5 + $0x18] sm:$0xff] }
  0x16   :  { %v462_v7 = vld [vmem:[#allocation7 + $0x20] sm:$0xff]  ;;  %v461_v9 = vld [vmem:[#allocation7 + $0x18] sm:$0xff]  ;;  %v452_v10 = vld [vmem:[#allocation5 + $0x10] sm:$0xff] }
  0x17   :  { %v460_v11 = vld [vmem:[#allocation7 + $0x10] sm:$0xff]  ;;  %v451_v12 = vld [vmem:[#allocation5 + $0x8] sm:$0xff]  ;;  %v450_v13 = vld [vmem:[#allocation5] sm:$0xff] }
  0x18   :  { %158 = vmatpush.bf16.msra.mxu0 %v456_v1  ;;  %v88_v14 = vld [vmem:[#allocation2] sm:$0xff]  ;;  %v459_v16 = vld [vmem:[#allocation7 + $0x8] sm:$0xff]  ;;  %v458_v17 = vld [vmem:[#allocation7] sm:$0xff] }
  0x19   :  { %240 = vmatpush.bf16.msra.mxu1 %v464_v3  ;;  %v107_v15 = vpack.c.bf16 %v88_v14, %v88_v14  ;;  %v473_v18 = vld [vmem:[#allocation8 + $0x38] sm:$0xff]  ;;  %v472_v19 = vld [vmem:[#allocation8 + $0x30] sm:$0xff]  ;;  %v471_v20 = vld [vmem:[#allocation8 + $0x28] sm:$0xff] }
  0x1a   :  { %321 = vmatpush.bf16.msra.mxu2 %v473_v18  ;;  %v470_v21 = vld [vmem:[#allocation8 + $0x20] sm:$0xff]  ;;  %v105_v22 = vld [vmem:[%s682_s2] sm:$0x1]  ;;  %v468_v25 = vld [vmem:[#allocation8 + $0x10] sm:$0xff] }
  0x1b   :  { %v469_v23 = vld [vmem:[#allocation8 + $0x18] sm:$0xff]  ;;  %v106_v24 = vunpack.c.l.bf16 %v105_v22  ;;  %v467_v32 = vld [vmem:[#allocation8 + $0x8] sm:$0xff]  ;;  %v466_v33 = vld [vmem:[#allocation8] sm:$0xff] }
  0x1c   :  { %159 = vmatpush.bf16.msra.mxu0 %v455_v4  ;;  %v187_v34 = vld [vmem:[%s684_s4] sm:$0x1]  ;;  %s342_s4 = sshll.u32 %s687_s7, 4  ;;  %s343_s4 = int_to_ptr.hbm [resolvable:$true] %s342_s4 }
  0x1d   :  { %241 = vmatpush.bf16.msra.mxu1 %v463_v5  ;;  %v108_v26 = vperm.slane %v106_v24, 0  ;;  %v188_v35 = vunpack.c.l.bf16 %v187_v34  ;;  %v269_v42 = vld [vmem:[%s686_s6] sm:$0x1] }
  0x1e   :  { %322 = vmatpush.bf16.msra.mxu2 %v472_v19  ;;  %v270_v43 = vunpack.c.l.bf16 %v269_v42 }
  0x1f   :  { %v190_v36 = vperm.slane %v188_v35, 0 }
  0x20   :  { %160 = vmatpush.bf16.msra.mxu0 %v454_v6  ;;  %v272_v44 = vperm.slane %v270_v43, 0 }
  0x21   :  { %242 = vmatpush.bf16.msra.mxu1 %v462_v7 }
  0x22   :  { %323 = vmatpush.bf16.msra.mxu2 %v471_v20 }
  0x24   :  { %161 = vmatpush.bf16.msra.mxu0 %v453_v8 }
  0x25   :  { %243 = vmatpush.bf16.msra.mxu1 %v461_v9 }
  0x26   :  { %324 = vmatpush.bf16.msra.mxu2 %v470_v21 }
  0x28   :  { %162 = vmatpush.bf16.msra.mxu0 %v452_v10 }
  0x29   :  { %244 = vmatpush.bf16.msra.mxu1 %v460_v11 }
  0x2a   :  { %325 = vmatpush.bf16.msra.mxu2 %v469_v23 }
  0x2c   :  { %163 = vmatpush.bf16.msra.mxu0 %v451_v12 }
  0x2d   :  { %245 = vmatpush.bf16.msra.mxu1 %v459_v16 }
  0x2e   :  { %326 = vmatpush.bf16.msra.mxu2 %v468_v25 }
  0x30   :  { %164 = vmatpush.bf16.msra.mxu0 %v450_v13 }
  0x31   :  { %246 = vmatpush.bf16.msra.mxu1 %v458_v17 }
  0x32   :  { %327 = vmatpush.bf16.msra.mxu2 %v467_v32 }
  0x33   :  { %165 = vmatmul.bf16.vlgmr.msra.gmra.mxu0 %v107_v15 }
  0x36   :  { %328 = vmatpush.bf16.msra.mxu2 %v466_v33 }
  0xb0   :  { %v166_v27 = vpop.f32.mrf.mxu0 }
  0xb1   :  { %v167_v28 = vadd.f32 %v166_v27, %v108_v26 }
  0xb3   :  { %v170_v29 = vmax.f32 %v167_v28, 0.0 }
  0xb5   :  { %v189_v30 = vpack.c.bf16 %v170_v29, %v170_v29 }
  0xb7   :  { %247 = vmatmul.bf16.vlgmr.msra.gmra.mxu1 %v189_v30 }
  0xb8   :  { %v168_v31 = vpop.f32.mrf.mxu0 }
 0x134   :  { %v248_v37 = vpop.f32.mrf.mxu1 }
 0x135   :  { %v249_v38 = vadd.f32 %v248_v37, %v190_v36 }
 0x137   :  { %v252_v39 = vmax.f32 %v249_v38, 0.0 }
 0x139   :  { %v271_v40 = vpack.c.bf16 %v252_v39, %v252_v39 }
 0x13b   :  { %329 = vmatmul.bf16.vlgmr.msra.gmra.mxu2 %v271_v40 }
 0x13c   :  { %v250_v41 = vpop.f32.mrf.mxu1 }
 0x1be   :  { %v330_v45 = vpop.f32.mrf.mxu2 }
 0x1bf   :  { %v331_v46 = vadd.f32 %v330_v45, %v272_v44 }
 0x1c1   :  { %334 = vst [vmem:[#allocation10] sm:$0xff] %v331_v46 }
 0x1c2   :  { %345 = dma.vmem_to_hbm [thread:$0]  %s341_s25, 128, %s343_s4, [#allocation4]  }
 0x1c6   :  { %v332_v47 = vpop.f32.mrf.mxu2 }
 0x1c7   :  { %607 = dma.done.wait [#allocation4], 128  }
 0x1c8   :  { %608 = vsyncadd [#allocation4], 4294967168 }
 0x1c9   :  { %350 = vsyncpa [#allocation3], 1 }
 0x1ca   :  { %351 = vsyncpa [#allocation6], 1 }
 0x1cb   :  { %352 = vsyncpa [#allocation9], 1 }
 0x1cc   :  { %353 = vsyncpa [#allocation4], 1 }

</bundles_post_ra>
